<compile_context>
chip_gen: v7x
topology: tpu7x:2x2x1
jax: 0.10.0
libtpu: 0.0.40
codegen_flags: <defaults>
</compile_context>

<pallas_src>
import jax
import jax.numpy as jnp
from jax.experimental import pallas as pl
from jax.experimental.pallas import tpu as pltpu


def _layer_scale_kernel(x_ref, g_ref, o_ref):
    # x_ref: (TM, D) slab of flattened x; g_ref: (1, D) gamma, broadcasts over
    # the sublane (row) axis.  Pure VPU elementwise work.
    o_ref[...] = x_ref[...] * g_ref[...]


def _round_down_multiple(x, m):
    return (x // m) * m


def layer_scale(x, gamma, *, row_tile=None):
    """out = x * gamma, gamma broadcast over the last dim. x: (..., D), gamma: (D,)."""
    *lead, D = x.shape
    assert gamma.shape == (D,), f"gamma must be ({D},), got {gamma.shape}"

    # Match dtypes so the multiply stays in x's precision (no promote/downcast).
    gamma2d = gamma.astype(x.dtype).reshape(1, D)

    rows = 1
    for s in lead:
        rows *= s
    x2d = x.reshape(rows, D)

    itemsize = jnp.dtype(x.dtype).itemsize
    if row_tile is None:
        # Block budget: 6 MiB per block -> 4x double-buffered footprint ~24 MiB.
        per_block_budget = 6 * 1024 * 1024
        granule = max(8, 32 // itemsize)  # 8 rows (f32), 16 (bf16), 32 (int8)
        cap = per_block_budget // max(1, D * itemsize)
        cap = max(granule, _round_down_multiple(min(cap, 4096), granule))
        if rows <= cap:
            row_tile = rows  # whole array in one block (block == full dims is legal)
        else:
            row_tile = cap   # multiple of the sublane granule -> legal block shape

    grid = (pl.cdiv(rows, row_tile),)  # uneven tail block is masked by Pallas

    out2d = pl.pallas_call(
        _layer_scale_kernel,
        out_shape=jax.ShapeDtypeStruct((rows, D), x.dtype),
        grid_spec=pltpu.PrefetchScalarGridSpec(
            num_scalar_prefetch=0,
            grid=grid,
            in_specs=[
                pl.BlockSpec((row_tile, D), lambda i: (i, 0)),
                pl.BlockSpec((1, D), lambda i: (0, 0)),  # gamma resident every step
            ],
            out_specs=pl.BlockSpec((row_tile, D), lambda i: (i, 0)),
        ),
        compiler_params=pltpu.CompilerParams(
            dimension_semantics=("parallel",),
            vmem_limit_bytes=32 * 1024 * 1024,
        ),
    )(x2d, gamma2d)
    return out2d.reshape(x.shape)


if __name__ == "__main__":
    # Small shapes consistent with LayerScale usage inside a ViT-style block:
    # batch=2, tokens=16, hidden dim=128 (lane-aligned).
    B, N, D = 2, 16, 128
    init_values = 1e-5

    key = jax.random.PRNGKey(0)
    x = jax.random.normal(key, (B, N, D), dtype=jnp.float32)
    # nn.Parameter(init_values * torch.ones(dim))
    gamma = init_values * jnp.ones((D,), dtype=jnp.float32)

    out = layer_scale(x, gamma)
    out = jax.block_until_ready(out)

    ref = x * gamma
    assert out.shape == (B, N, D)
    assert out.dtype == x.dtype
    assert jnp.allclose(out, ref, atol=1e-6, rtol=1e-6)

    # bf16 path: gamma is cast to x.dtype inside the wrapper, tile granule = 16.
    x_bf16 = x.astype(jnp.bfloat16)
    out_bf16 = jax.block_until_ready(layer_scale(x_bf16, gamma))
    ref_bf16 = x_bf16 * gamma.astype(jnp.bfloat16)
    assert out_bf16.dtype == jnp.bfloat16
    assert jnp.allclose(out_bf16.astype(jnp.float32),
                        ref_bf16.astype(jnp.float32), atol=1e-2, rtol=1e-2)

    # Ragged-row path: rows not a multiple of the sublane granule (tail masking).
    x_odd = jax.random.normal(jax.random.PRNGKey(1), (3, 5, D), dtype=jnp.float32)
    out_odd = jax.block_until_ready(layer_scale(x_odd, gamma))
    assert jnp.allclose(out_odd, x_odd * gamma, atol=1e-6, rtol=1e-6)

    print("KERNEL_OK")
</pallas_src>

<mosaic_0001>
module attributes {stable_mosaic.version = 11 : i64} {
  func.func @_layer_scale_kernel(%arg0: i32, %arg1: memref<32x128xf32, #tpu.memory_space<vmem>>, %arg2: memref<1x128xf32, #tpu.memory_space<vmem>>, %arg3: memref<32x128xf32, #tpu.memory_space<vmem>>) attributes {dimension_semantics = [#tpu.dimension_semantics<parallel>], iteration_bounds = array<i64: 1>, scalar_prefetch = 0 : i64, scratch_operands = 0 : i64, tpu.core_type = #tpu.core_type<tc>, window_params = [{transform_indices = @transform_0, window_bounds = array<i64: 32, 128>}, {pipeline_mode = #tpu.pipeline_mode<synchronous>, transform_indices = @transform_1, window_bounds = array<i64: 1, 128>}, {transform_indices = @transform_2, window_bounds = array<i64: 32, 128>}]} {
    %c0 = arith.constant 0 : index
    %c0_0 = arith.constant 0 : index
    %0 = vector.load %arg1[%c0, %c0_0] : memref<32x128xf32, #tpu.memory_space<vmem>>, vector<32x128xf32>
    %c0_1 = arith.constant 0 : index
    %c0_2 = arith.constant 0 : index
    %1 = vector.load %arg2[%c0_1, %c0_2] : memref<1x128xf32, #tpu.memory_space<vmem>>, vector<1x128xf32>
    %2 = vector.broadcast %1 : vector<1x128xf32> to vector<32x128xf32>
    %3 = arith.mulf %0, %2 : vector<32x128xf32>
    %c0_3 = arith.constant 0 : index
    %c0_4 = arith.constant 0 : index
    %4 = vector.load %arg3[%c0_3, %c0_4] : memref<32x128xf32, #tpu.memory_space<vmem>>, vector<32x128xf32>
    tpu.vector_store %arg3[%c0_3, %c0_4], %3 {strides = array<i32>} : memref<32x128xf32, #tpu.memory_space<vmem>>, vector<32x128xf32>,
    return
  }
  func.func @transform_0(%arg0: i32) -> (i32, i32) {
    %c0_i32 = arith.constant 0 : i32
    %c0_i32_0 = arith.constant 0 : i32
    return %arg0, %c0_i32 : i32, i32
  }
  func.func @transform_1(%arg0: i32) -> (i32, i32) {
    %c0_i32 = arith.constant 0 : i32
    %c0_i32_0 = arith.constant 0 : i32
    %c0_i32_1 = arith.constant 0 : i32
    return %c0_i32, %c0_i32_0 : i32, i32
  }
  func.func @transform_2(%arg0: i32) -> (i32, i32) {
    %c0_i32 = arith.constant 0 : i32
    %c0_i32_0 = arith.constant 0 : i32
    return %arg0, %c0_i32 : i32, i32
  }
}

</mosaic_0001>

<bundles_post_ra>
// kernel: tpu_custom_call.1
= control target key start
LH: loop header
LB: loop body
LE: loop exit
PB: predicated region body
PF: predicated region fallthrough
CT: control target
= control target key end

     0   :  { %7 = vsyncpa [#allocation3], 0  ;;  %s167_s0 = inlined_call_operand.hbm [shape: f32[32,128], index: 0, kind: input, shape index: {}]   ;;  %s168_s1 = inlined_call_operand.vmem [shape: f32[1,128], index: 1, kind: input, shape index: {}]   ;;  %s169_s2 = inlined_call_operand.hbm [shape: f32[32,128], index: 2, kind: output, shape index: {}]  }
   0x1   :  { %8 = vsyncpa [#allocation4], 0  ;;  %s115_s9 = smov [#allocation2]   ;;  %s67_s13 = scalar_lea.hbm %s167_s0, 512 }
   0x2   :  { %s14_s10 = sshll.u32 %s115_s9, 4  ;;  %p68_p0 = scmp.ne.s32.totalorder %s167_s0, %s67_s13  ;;  %s15_s10 = int_to_ptr.vmem [resolvable:$true] %s14_s10 }
   0x3   :  { %p71_p1 = scmp.lt.u32.totalorder %s67_s13, %s167_s0 }
   0x5   :  { %p73_p2 = pnand %p71_p1, %p68_p0 }
   0x7   :  { %76 = shalt.err (!%p73_p2)
}
   0x8   :  { %s77_s18 = scalar_lea.vmem %s15_s10, 512  ;;  %p82_p4 = scmp.lt.s32.totalorder %s15_s10, %s15_s10 }
   0x9   :  { %p78_p3 = scmp.ne.s32.totalorder %s15_s10, %s77_s18  ;;  %p83_p5 = scmp.lt.s32.totalorder %s77_s18, %s77_s18 }
   0xb   :  { %p84_p6 = por %p83_p5, %p82_p4 }
   0xd   :  { %p85_p7 = pnand %p84_p6, %p78_p3 }
   0xf   :  { %88 = shalt.err (!%p85_p7)
}
  0x10   :  { %s116_s19 = smov 128   ;;  %s117_s20 = smov 8  }
  0x11   :  { %20 = dma.hbm_to_vmem [thread:$0]  %s167_s0, 512, %s15_s10, [#allocation3], %s116_s19, %s116_s19, %s117_s20  }
  0x12   :  { %111 = dma.done.wait [#allocation3], 512  }
  0x13   :  { %112 = vsyncadd [#allocation3], 4294966784  ;;  %s118_s23 = smov [#allocation5]   ;;  %v26_v0 = vld [vmem:[#allocation2] sm:$0xff]  ;;  %v27_v2 = vld [vmem:[#allocation2 + $0x8] sm:$0xff] }
  0x14   :  { %s50_s24 = sshll.u32 %s118_s23, 4  ;;  %v62_v1 = vld [vmem:[%s168_s1] ss:$0 sm:$0xff]  ;;  %v28_v5 = vld [vmem:[#allocation2 + $0x10] sm:$0xff]  ;;  %v29_v6 = vld [vmem:[#allocation2 + $0x18] sm:$0xff]  ;;  %s51_s24 = int_to_ptr.vmem [resolvable:$true] %s50_s24 }
  0x15   :  { %v37_v3 = vmul.f32 %v62_v1, %v26_v0  ;;  %v38_v4 = vmul.f32 %v62_v1, %v27_v2  ;;  %v39_v7 = vmul.f32 %v62_v1, %v28_v5  ;;  %v40_v8 = vmul.f32 %v62_v1, %v29_v6  ;;  %s89_s0 = scalar_lea.vmem %s51_s24, 512  ;;  %p94_p9 = scmp.lt.s32.totalorder %s51_s24, %s51_s24 }
  0x16   :  { %p90_p8 = scmp.ne.s32.totalorder %s51_s24, %s89_s0  ;;  %p95_p10 = scmp.lt.s32.totalorder %s89_s0, %s89_s0 }
  0x17   :  { %41 = vst [vmem:[#allocation5] sm:$0xff] %v37_v3  ;;  %42 = vst [vmem:[#allocation5 + $0x8] sm:$0xff] %v38_v4 }
  0x18   :  { %43 = vst [vmem:[#allocation5 + $0x10] sm:$0xff] %v39_v7  ;;  %44 = vst [vmem:[#allocation5 + $0x18] sm:$0xff] %v40_v8  ;;  %p96_p11 = por %p95_p10, %p94_p9 }
  0x1a   :  { %p97_p12 = pnand %p96_p11, %p90_p8 }
  0x1c   :  { %100 = shalt.err (!%p97_p12)
}
  0x1d   :  { %s101_s28 = scalar_lea.hbm %s169_s2, 512 }
  0x1e   :  { %p102_p13 = scmp.ne.s32.totalorder %s169_s2, %s101_s28  ;;  %p105_p0 = scmp.lt.u32.totalorder %s101_s28, %s169_s2 }
  0x20   :  { %p107_p1 = pnand %p105_p0, %p102_p13 }
  0x22   :  { %110 = shalt.err (!%p107_p1)
}
  0x23   :  { %56 = dma.vmem_to_hbm [thread:$0]  %s51_s24, 512, %s169_s2, [#allocation4], %s116_s19, %s116_s19, %s117_s20  }
  0x24   :  { %113 = dma.done.wait [#allocation4], 512  }
  0x25   :  { %114 = vsyncadd [#allocation4], 4294966784 }
  0x26   :  { %60 = vsyncpa [#allocation3], 1 }
  0x27   :  { %61 = vsyncpa [#allocation4], 1 }

</bundles_post_ra>
